<compile_context>
chip_gen: v7x
topology: tpu7x:2x2x1
jax: 0.10.0
libtpu: 0.0.40
codegen_flags: <defaults>
</compile_context>

<pallas_src>
import functools
import math

import numpy as np
import jax
import jax.numpy as jnp
from jax.experimental import pallas as pl
from jax.experimental.pallas import tpu as pltpu

LANE = 128


def _round_up(x, m):
    return ((x + m - 1) // m) * m


def _pad2d(a, rows, cols):
    return jnp.pad(a, ((0, rows - a.shape[0]), (0, cols - a.shape[1])))


# ----------------------- standalone SReLU kernel ---------------------------

def _srelu_kernel(x_ref, b_ref, o_ref):
    # relu(x - b) + b  ==  max(x, b)
    o_ref[...] = jnp.maximum(x_ref[...], b_ref[...])


def srelu(x, bias):
    """SReLU forward: relu(x - bias) + bias, bias broadcast over last dim."""
    n, c = x.shape
    c_pad = _round_up(c, LANE)
    # Mem-bound elementwise op: use large row tiles (512-1024) to reach the
    # HBM roofline; cap the block at ~2 MiB so it stays comfortably in VMEM.
    max_rows = max(8, ((2 << 20) // (4 * c_pad)) // 8 * 8)
    tn = min(_round_up(n, 8), 1024, max_rows)
    n_pad = _round_up(n, tn)
    x_p = _pad2d(x, n_pad, c_pad)
    b_p = _pad2d(bias.reshape(1, c).astype(x.dtype), 1, c_pad)
    out = pl.pallas_call(
        _srelu_kernel,
        out_shape=jax.ShapeDtypeStruct((n_pad, c_pad), x.dtype),
        grid=(n_pad // tn,),
        in_specs=[pl.BlockSpec((tn, c_pad), lambda i: (i, 0)),
                  pl.BlockSpec((1, c_pad), lambda i: (0, 0))],
        out_specs=pl.BlockSpec((tn, c_pad), lambda i: (i, 0)),
        compiler_params=pltpu.CompilerParams(
            dimension_semantics=("parallel",),
            vmem_limit_bytes=64 << 20),
    )(x_p, b_p)
    return out[:n, :c]


# ----------------------- fused EGNN forward kernel --------------------------

def _egnn_fused_kernel(adj_ref, h0_hbm, qs_ref, *rest,
                       tm, tk, rw, beta, use_conv_w):
    if use_conv_w:
        (convw_ref, sb_ref, w_out_ref, b_out_ref,
         out_ref, h_ref, x0_ref, acc_ref, copy_sem) = rest
    else:
        convw_ref = None
        (sb_ref, w_out_ref, b_out_ref,
         out_ref, h_ref, x0_ref, acc_ref, copy_sem) = rest

    l = pl.program_id(0)   # layer
    i = pl.program_id(1)   # node row tile
    k = pl.program_id(2)   # reduction (adjacency column) tile
    nl = pl.num_programs(0)
    nk = pl.num_programs(2)

    # ---- prologue (runs exactly once): bring h0 = relu(x@W_in + b_in) ----
    # h0 is computed once outside the kernel; DMA it from HBM into the x0
    # residual scratch and into the layer-0 h buffer (bf16).
    @pl.when((l == 0) & (i == 0) & (k == 0))
    def _():
        cp = pltpu.make_async_copy(h0_hbm, x0_ref, copy_sem)
        cp.start()
        cp.wait()
        h_ref[0, :, :] = x0_ref[...]

    src = l % 2            # h buffer holding layer l's input
    dst = (l + 1) % 2      # h buffer receiving layer l's output
    h_src = h_ref.at[src]
    h_dst = h_ref.at[dst]

    # ---- partial GCN aggregation: acc += q(A_hat*coef)[i, k] @ h[k] ----
    @pl.when(k == 0)
    def _():
        acc_ref[...] = jnp.zeros_like(acc_ref)

    k_off = pl.multiple_of(k * tk, tk)
    h_cols = h_src[pl.ds(k_off, tk), :]                       # bf16, no cast
    adj_tile = adj_ref[...].astype(jnp.bfloat16)              # int8 dequant
    acc_ref[...] += jnp.dot(adj_tile, h_cols,
                            preferred_element_type=jnp.float32)

    # ---- finish this row tile: scale, residual mix, (weight), SReLU ----
    @pl.when(k == nk - 1)
    def _():
        row = pl.multiple_of(i * tm, tm)
        h_i = h_src[pl.ds(row, tm), :].astype(jnp.float32)
        x0_i = x0_ref[pl.ds(row, tm), :].astype(jnp.float32)
        z = qs_ref[0] * acc_ref[...] + rw * h_i + beta * x0_i
        if use_conv_w:
            # bf16 MXU path (f32xf32 matmul decomposes into multiple passes)
            z = jnp.dot(z.astype(jnp.bfloat16), convw_ref[0],
                        preferred_element_type=jnp.float32)
        # SReLU: relu(z - b) + b == max(z, b)
        h_new = jnp.maximum(z, sb_ref[0])
        h_dst[pl.ds(row, tm), :] = h_new.astype(h_ref.dtype)

        # last layer: fused output Linear
        @pl.when(l == nl - 1)
        def _():
            y = jnp.dot(h_new, w_out_ref[...],
                        preferred_element_type=jnp.float32)
            out_ref[...] = (y + b_out_ref[...]).astype(out_ref.dtype)


# ----------------------------- JAX glue ------------------------------------

def build_norm_adj(edge_index, num_nodes):
    """Dense GCN-normalized adjacency with self-loops (EGNNConv.norm)."""
    row, col = edge_index[0], edge_index[1]
    loop = jnp.arange(num_nodes, dtype=row.dtype)
    row = jnp.concatenate([row, loop])
    col = jnp.concatenate([col, loop])
    ew = jnp.ones(row.shape, jnp.float32)
    deg = jnp.zeros((num_nodes,), jnp.float32).at[row].add(ew)
    dinv = jnp.where(deg > 0, jax.lax.rsqrt(deg), 0.0)
    norm = dinv[row] * ew * dinv[col]
    adj = jnp.zeros((num_nodes, num_nodes), jnp.float32).at[col, row].add(norm)
    return adj


def _detect_scaled_identity(conv_ws):
    """Return s if every layer weight equals s * I (same s for all), else None.

    Must be called on concrete (non-traced) parameters.
    """
    scale = None
    for w in conv_ws:
        w = np.asarray(w)
        if w.ndim != 2 or w.shape[0] != w.shape[1]:
            return None
        s = float(w[0, 0])
        if not np.allclose(w, s * np.eye(w.shape[0], dtype=w.dtype)):
            return None
        if scale is None:
            scale = s
        elif abs(scale - s) > 1e-12:
            return None
    return scale


def _pick_tiles(n):
    """Return (n_pad, tm, tk) for the adjacency tiling."""
    if n <= 1024:
        n_pad = _round_up(n, 32)          # int8 sublane packing
        return n_pad, n_pad, n_pad        # single tile
    # Large tiles amortise the ~0.35us per-grid-step overhead; tk=1024 is safe
    # on all generations (incl. v7x's 64 MiB VMEM) with an int8 adj stream.
    n_pad = _round_up(n, 1024)
    return n_pad, 512, 1024


def _adj_block_spec(tm, tk):
    """Adjacency tile spec with a deeper (3-buffer) pipeline when supported."""
    idx = lambda l, i, k: (i, k)
    try:
        return pl.BlockSpec((tm, tk), idx, pipeline_mode=pl.Buffered(3))
    except (AttributeError, TypeError):
        return pl.BlockSpec((tm, tk), idx)


def _vmem_limit_bytes(n_pad, h_pad, c_pad, tm, tk, adj_el_bytes, use_conv_w):
    est = (2 * n_pad * h_pad * 2          # h double buffer (bf16)
           + n_pad * h_pad * 2            # x0 (bf16)
           + tm * h_pad * 4               # f32 accumulator
           + 3 * tm * tk * adj_el_bytes   # adj stream buffers
           + 2 * tm * c_pad * 4           # out buffers
           + 2 * h_pad * c_pad * 4        # w_out
           + 8 * h_pad * 4)               # biases / misc
    if use_conv_w:
        est += 2 * h_pad * h_pad * 2
    try:
        cap = pltpu.get_tpu_info().vmem_capacity_bytes
    except Exception:
        cap = 64 << 20                    # v7x physical VMEM (worst case)
    want = est + est // 4 + (16 << 20)
    return int(max(32 << 20, min(want, cap - (4 << 20))))


def init_params(key, num_feats, hidden, num_classes, num_layers):
    k_in_w, k_in_b, k_out_w, k_out_b = jax.random.split(key, 4)
    lim_in = 1.0 / math.sqrt(num_feats)
    lim_out = 1.0 / math.sqrt(hidden)
    return {
        "w_in": jax.random.uniform(k_in_w, (num_feats, hidden), jnp.float32,
                                   -lim_in, lim_in),
        "b_in": jax.random.uniform(k_in_b, (1, hidden), jnp.float32,
                                   -lim_in, lim_in),
        "w_out": jax.random.uniform(k_out_w, (hidden, num_classes), jnp.float32,
                                    -lim_out, lim_out),
        "b_out": jax.random.uniform(k_out_b, (1, num_classes), jnp.float32,
                                    -lim_out, lim_out),
        # EGNNConv weight = eye(hidden) * sqrt(c_max);  c_max == 1
        "conv_w": [jnp.eye(hidden, dtype=jnp.float32) * math.sqrt(1.0)
                   for _ in range(num_layers)],
        # SReLU bias = constant -10 per channel
        "srelu_b": [jnp.full((1, hidden), -10.0, jnp.float32)
                    for _ in range(num_layers)],
    }


def egnn_forward(x, edge_index, params, *, num_layers, beta=0.1, c_min=0.2,
                 adj_format="int8"):
    num_nodes = x.shape[0]
    hidden = params["w_in"].shape[1]
    num_classes = params["w_out"].shape[1]

    residual_weight = c_min - beta
    coef = 1.0 - residual_weight - beta

    # Fold a scaled-identity conv weight (eye * sqrt(c_max)) into the scalars.
    ident_scale = _detect_scaled_identity(params["conv_w"])
    use_conv_w = ident_scale is None
    s = 1.0 if use_conv_w else ident_scale
    adj_scale = coef * s
    rw = residual_weight * s
    bt = beta * s

    n_pad, tm, tk = _pick_tiles(num_nodes)
    h_pad = _round_up(hidden, LANE)
    c_pad = _round_up(num_classes, LANE)

    # Dense symmetric-normalized adjacency, pre-scaled by the mixing coef.
    adj = build_norm_adj(edge_index, num_nodes)
    adj_scaled = adj * adj_scale
    if adj_format == "int8":
        # Quantize the HBM-bound stream to int8; dequant scale rides in SMEM
        # and is applied once per row tile in the epilogue (MXU stays bf16).
        amax = jnp.maximum(jnp.max(jnp.abs(adj_scaled)), 1e-30)
        qs = amax / 127.0
        adj_p = _pad2d(
            jnp.clip(jnp.round(adj_scaled / qs), -127.0, 127.0).astype(jnp.int8),
            n_pad, n_pad)
        qs_arr = jnp.reshape(qs, (1,)).astype(jnp.float32)
        adj_el_bytes = 1
    else:  # bf16 fallback
        adj_p = _pad2d(adj_scaled, n_pad, n_pad).astype(jnp.bfloat16)
        qs_arr = jnp.ones((1,), jnp.float32)
        adj_el_bytes = 2

    # One-shot input Linear + ReLU outside the kernel (frees the x buffer that
    # previously sat resident in VMEM); stored bf16 and DMA'd in the prologue.
    h0 = jnp.maximum(x.astype(jnp.float32) @ params["w_in"] + params["b_in"], 0.0)
    h0_p = _pad2d(h0, n_pad, h_pad).astype(jnp.bfloat16)

    w_out_p = _pad2d(params["w_out"], h_pad, c_pad)
    b_out_p = _pad2d(params["b_out"], 1, c_pad)
    sb_p = jnp.stack([_pad2d(b, 1, h_pad) for b in params["srelu_b"]])  # (L,1,Hp)

    operands = [adj_p, h0_p, qs_arr]
    in_specs = [
        _adj_block_spec(tm, tk),                               # adj tile (int8)
        pl.BlockSpec(memory_space=pl.ANY),                     # h0 (HBM, DMA'd once)
        pl.BlockSpec(memory_space=pltpu.MemorySpace.SMEM),     # dequant scale
    ]
    if use_conv_w:
        convw_p = jnp.stack([_pad2d(w, h_pad, h_pad)
                             for w in params["conv_w"]]).astype(jnp.bfloat16)
        operands.append(convw_p)                               # (L, Hp, Hp) bf16
        in_specs.append(
            pl.BlockSpec((1, h_pad, h_pad), lambda l, i, k: (l, 0, 0)))
    operands += [sb_p, w_out_p, b_out_p]
    in_specs += [
        pl.BlockSpec((1, 1, h_pad), lambda l, i, k: (l, 0, 0)),  # srelu bias
        pl.BlockSpec((h_pad, c_pad), lambda l, i, k: (0, 0)),    # w_out
        pl.BlockSpec((1, c_pad), lambda l, i, k: (0, 0)),        # b_out
    ]

    # Output tile index collapses to 0 for all non-final layers so Pallas never
    # writes stale VMEM tiles back to HBM before the final layer.
    def out_index_map(l, i, k):
        return (jnp.where(l == num_layers - 1, i, 0), 0)

    kernel = functools.partial(_egnn_fused_kernel, tm=tm, tk=tk,
                               rw=rw, beta=bt, use_conv_w=use_conv_w)

    vmem_limit = _vmem_limit_bytes(n_pad, h_pad, c_pad, tm, tk,
                                   adj_el_bytes, use_conv_w)

    out = pl.pallas_call(
        kernel,
        out_shape=jax.ShapeDtypeStruct((n_pad, c_pad), jnp.float32),
        grid_spec=pltpu.PrefetchScalarGridSpec(
            num_scalar_prefetch=0,
            grid=(num_layers, n_pad // tm, n_pad // tk),
            in_specs=in_specs,
            out_specs=pl.BlockSpec((tm, c_pad), out_index_map),
            scratch_shapes=[
                pltpu.VMEM((2, n_pad, h_pad), jnp.bfloat16),  # h double buffer
                pltpu.VMEM((n_pad, h_pad), jnp.bfloat16),     # x0 residual
                pltpu.VMEM((tm, h_pad), jnp.float32),         # agg accumulator
                pltpu.SemaphoreType.DMA(()),                  # h0 prologue DMA
            ]),
        compiler_params=pltpu.CompilerParams(
            # layer axis is a strict dependency; the row axis reads the WHOLE
            # previous-layer h from core-local scratch, so it cannot be split
            # across megacore TCs for this fused kernel.
            dimension_semantics=("arbitrary", "arbitrary", "arbitrary"),
            vmem_limit_bytes=vmem_limit),
    )(*operands)
    return out[:num_nodes, :num_classes]


def egnn_forward_ref(x, edge_index, params, *, num_layers, beta=0.1, c_min=0.2):
    """Pure-JAX reference (mirrors the PyTorch module in eval mode)."""
    adj = build_norm_adj(edge_index, x.shape[0])
    h = jnp.maximum(x @ params["w_in"] + params["b_in"], 0.0)
    x0 = h
    rw = c_min - beta
    coef = 1.0 - rw - beta
    for i in range(num_layers):
        hi = coef * (adj @ h) + rw * h + beta * x0
        hi = hi @ params["conv_w"][i]
        b = params["srelu_b"][i]
        h = jnp.maximum(hi - b, 0.0) + b          # SReLU
    return h @ params["w_out"] + params["b_out"]


# ----------------------------- main -----------------------------------------

if __name__ == "__main__":
    N, F_IN, HIDDEN, CLASSES, LAYERS, E = 32, 16, 32, 8, 2, 64

    key = jax.random.PRNGKey(0)
    k_x, k_src, k_off, k_params, k_srelu = jax.random.split(key, 5)

    x = jax.random.normal(k_x, (N, F_IN), jnp.float32)
    src = jax.random.randint(k_src, (E,), 0, N, dtype=jnp.int32)
    off = jax.random.randint(k_off, (E,), 1, N, dtype=jnp.int32)
    dst = (src + off) % N                       # no self loops
    edge_index = jnp.stack([src, dst], axis=0)  # (2, E)

    params = init_params(k_params, F_IN, HIDDEN, CLASSES, LAYERS)

    # -- standalone SReLU kernel (the spec module) --
    xs = jax.random.normal(k_srelu, (N, HIDDEN), jnp.float32)
    sb = jnp.full((HIDDEN,), -10.0, jnp.float32)
    y = jax.block_until_ready(srelu(xs, sb))
    y_ref = jnp.maximum(xs - sb, 0.0) + sb
    assert y.shape == (N, HIDDEN)
    assert jnp.allclose(y, y_ref, atol=1e-6), "SReLU mismatch"

    # -- fused EGNN forward (Linear+ReLU -> L x (EGNNConv + SReLU) -> Linear) --
    out = jax.block_until_ready(
        egnn_forward(x, edge_index, params, num_layers=LAYERS))
    assert out.shape == (N, CLASSES)

    out_ref = egnn_forward_ref(x, edge_index, params, num_layers=LAYERS)
    assert jnp.allclose(out, out_ref, rtol=5e-2, atol=5e-2), (
        "max abs err = %f" % float(jnp.max(jnp.abs(out - out_ref))))

    print("KERNEL_OK")
</pallas_src>

<mosaic_0001>
module attributes {stable_mosaic.version = 11 : i64} {
  func.func @_srelu_kernel(%arg0: i32, %arg1: memref<32x128xf32, #tpu.memory_space<vmem>>, %arg2: memref<1x128xf32, #tpu.memory_space<vmem>>, %arg3: memref<32x128xf32, #tpu.memory_space<vmem>>) attributes {dimension_semantics = [#tpu.dimension_semantics<parallel>], iteration_bounds = array<i64: 1>, scalar_prefetch = 0 : i64, scratch_operands = 0 : i64, tpu.core_type = #tpu.core_type<tc>, window_params = [{transform_indices = @transform_0, window_bounds = array<i64: 32, 128>}, {pipeline_mode = #tpu.pipeline_mode<synchronous>, transform_indices = @transform_1, window_bounds = array<i64: 1, 128>}, {transform_indices = @transform_2, window_bounds = array<i64: 32, 128>}]} {
    %c0 = arith.constant 0 : index
    %c0_0 = arith.constant 0 : index
    %0 = vector.load %arg1[%c0, %c0_0] : memref<32x128xf32, #tpu.memory_space<vmem>>, vector<32x128xf32>
    %c0_1 = arith.constant 0 : index
    %c0_2 = arith.constant 0 : index
    %1 = vector.load %arg2[%c0_1, %c0_2] : memref<1x128xf32, #tpu.memory_space<vmem>>, vector<1x128xf32>
    %2 = vector.broadcast %1 : vector<1x128xf32> to vector<32x128xf32>
    %3 = arith.maximumf %0, %2 : vector<32x128xf32>
    %c0_3 = arith.constant 0 : index
    %c0_4 = arith.constant 0 : index
    %4 = vector.load %arg3[%c0_3, %c0_4] : memref<32x128xf32, #tpu.memory_space<vmem>>, vector<32x128xf32>
    tpu.vector_store %arg3[%c0_3, %c0_4], %3 {strides = array<i32>} : memref<32x128xf32, #tpu.memory_space<vmem>>, vector<32x128xf32>,
    return
  }
  func.func @transform_0(%arg0: i32) -> (i32, i32) {
    %c0_i32 = arith.constant 0 : i32
    %c0_i32_0 = arith.constant 0 : i32
    return %arg0, %c0_i32 : i32, i32
  }
  func.func @transform_1(%arg0: i32) -> (i32, i32) {
    %c0_i32 = arith.constant 0 : i32
    %c0_i32_0 = arith.constant 0 : i32
    %c0_i32_1 = arith.constant 0 : i32
    return %c0_i32, %c0_i32_0 : i32, i32
  }
  func.func @transform_2(%arg0: i32) -> (i32, i32) {
    %c0_i32 = arith.constant 0 : i32
    %c0_i32_0 = arith.constant 0 : i32
    return %arg0, %c0_i32 : i32, i32
  }
}

</mosaic_0001>

<bundles_post_ra>
// kernel: tpu_custom_call.1
= control target key start
LH: loop header
LB: loop body
LE: loop exit
PB: predicated region body
PF: predicated region fallthrough
CT: control target
= control target key end

     0   :  { %7 = vsyncpa [#allocation3], 0  ;;  %s215_s0 = inlined_call_operand.hbm [shape: f32[32,128], index: 0, kind: input, shape index: {}]   ;;  %s216_s1 = inlined_call_operand.hbm [shape: f32[1,128], index: 1, kind: input, shape index: {}]   ;;  %s217_s2 = inlined_call_operand.hbm [shape: f32[32,128], index: 2, kind: output, shape index: {}]  }
   0x1   :  { %8 = vsyncpa [#allocation6], 0 }
   0x2   :  { %9 = vsyncpa [#allocation4], 0  ;;  %s153_s9 = smov [#allocation2]   ;;  %s81_s13 = scalar_lea.hbm %s215_s0, 512 }
   0x3   :  { %s15_s10 = sshll.u32 %s153_s9, 4  ;;  %p82_p0 = scmp.ne.s32.totalorder %s215_s0, %s81_s13  ;;  %s16_s10 = int_to_ptr.vmem [resolvable:$true] %s15_s10 }
   0x4   :  { %p85_p1 = scmp.lt.u32.totalorder %s81_s13, %s215_s0 }
   0x6   :  { %p87_p2 = pnand %p85_p1, %p82_p0 }
   0x8   :  { %90 = shalt.err (!%p87_p2)
}
   0x9   :  { %s91_s18 = scalar_lea.vmem %s16_s10, 512  ;;  %p96_p4 = scmp.lt.s32.totalorder %s16_s10, %s16_s10 }
   0xa   :  { %p92_p3 = scmp.ne.s32.totalorder %s16_s10, %s91_s18  ;;  %p97_p5 = scmp.lt.s32.totalorder %s91_s18, %s91_s18 }
   0xc   :  { %p98_p6 = por %p97_p5, %p96_p4 }
   0xe   :  { %p99_p7 = pnand %p98_p6, %p92_p3 }
  0x10   :  { %102 = shalt.err (!%p99_p7)
}
  0x11   :  { %s154_s19 = smov 128   ;;  %s155_s20 = smov 8  }
  0x12   :  { %21 = dma.hbm_to_vmem [thread:$0]  %s215_s0, 512, %s16_s10, [#allocation3], %s154_s19, %s154_s19, %s155_s20  }
  0x13   :  { %s156_s23 = smov [#allocation5]   ;;  %s103_s27 = scalar_lea.hbm %s216_s1, 16 }
  0x14   :  { %s28_s24 = sshll.u32 %s156_s23, 4  ;;  %p104_p8 = scmp.ne.s32.totalorder %s216_s1, %s103_s27  ;;  %s29_s24 = int_to_ptr.vmem [resolvable:$true] %s28_s24 }
  0x15   :  { %p107_p9 = scmp.lt.u32.totalorder %s103_s27, %s216_s1 }
  0x17   :  { %p109_p10 = pnand %p107_p9, %p104_p8 }
  0x19   :  { %112 = shalt.err (!%p109_p10)
}
  0x1a   :  { %s113_s4 = scalar_lea.vmem %s29_s24, 16  ;;  %s117_s0 = scalar_lea.vmem %s29_s24, 32 }
  0x1b   :  { %p114_p11 = scmp.ne.s32.totalorder %s29_s24, %s113_s4  ;;  %p118_p12 = scmp.lt.s32.totalorder %s29_s24, %s29_s24 }
  0x1c   :  { %p119_p13 = scmp.lt.s32.totalorder %s117_s0, %s113_s4 }
  0x1e   :  { %p120_p0 = por %p119_p13, %p118_p12 }
  0x20   :  { %p121_p1 = pnand %p120_p0, %p114_p11 }
  0x22   :  { %124 = shalt.err (!%p121_p1)
}
  0x23   :  { %31 = dma.hbm_to_vmem [thread:$0]  %s216_s1, 16, %s29_s24, [#allocation6]  }
  0x24   :  { %147 = dma.done.wait [#allocation3], 512  }
  0x25   :  { %148 = vsyncadd [#allocation3], 4294966784 }
  0x26   :  { %149 = dma.done.wait [#allocation6], 16  }
  0x27   :  { %150 = vsyncadd [#allocation6], 4294967280  ;;  %s157_s7 = smov [#allocation7]   ;;  %v38_v0 = vld [vmem:[#allocation2] sm:$0xff]  ;;  %v39_v2 = vld [vmem:[#allocation2 + $0x8] sm:$0xff] }
  0x28   :  { %s62_s8 = sshll.u32 %s157_s7, 4  ;;  %v75_v1 = vld [vmem:[#allocation5] ss:$0 sm:$0xff]  ;;  %v40_v5 = vld [vmem:[#allocation2 + $0x10] sm:$0xff]  ;;  %v41_v6 = vld [vmem:[#allocation2 + $0x18] sm:$0xff]  ;;  %s63_s8 = int_to_ptr.vmem [resolvable:$true] %s62_s8 }
  0x29   :  { %v49_v3 = vmax.f32 %v38_v0, %v75_v1  ;;  %v50_v4 = vmax.f32 %v39_v2, %v75_v1  ;;  %v51_v7 = vmax.f32 %v40_v5, %v75_v1  ;;  %v52_v8 = vmax.f32 %v41_v6, %v75_v1  ;;  %s125_s1 = scalar_lea.vmem %s63_s8, 512  ;;  %p130_p3 = scmp.lt.s32.totalorder %s63_s8, %s63_s8 }
  0x2a   :  { %p126_p2 = scmp.ne.s32.totalorder %s63_s8, %s125_s1  ;;  %p131_p4 = scmp.lt.s32.totalorder %s125_s1, %s125_s1 }
  0x2b   :  { %53 = vst [vmem:[#allocation7] sm:$0xff] %v49_v3  ;;  %54 = vst [vmem:[#allocation7 + $0x8] sm:$0xff] %v50_v4 }
  0x2c   :  { %55 = vst [vmem:[#allocation7 + $0x10] sm:$0xff] %v51_v7  ;;  %56 = vst [vmem:[#allocation7 + $0x18] sm:$0xff] %v52_v8  ;;  %p132_p5 = por %p131_p4, %p130_p3 }
  0x2e   :  { %p133_p6 = pnand %p132_p5, %p126_p2 }
  0x30   :  { %136 = shalt.err (!%p133_p6)
}
  0x31   :  { %s137_s11 = scalar_lea.hbm %s217_s2, 512 }
  0x32   :  { %p138_p7 = scmp.ne.s32.totalorder %s217_s2, %s137_s11  ;;  %p141_p8 = scmp.lt.u32.totalorder %s137_s11, %s217_s2 }
  0x34   :  { %p143_p9 = pnand %p141_p8, %p138_p7 }
  0x36   :  { %146 = shalt.err (!%p143_p9)
}
  0x37   :  { %68 = dma.vmem_to_hbm [thread:$0]  %s63_s8, 512, %s217_s2, [#allocation4], %s154_s19, %s154_s19, %s155_s20  }
  0x38   :  { %151 = dma.done.wait [#allocation4], 512  }
  0x39   :  { %152 = vsyncadd [#allocation4], 4294966784 }
  0x3a   :  { %72 = vsyncpa [#allocation3], 1 }
  0x3b   :  { %73 = vsyncpa [#allocation6], 1 }
  0x3c   :  { %74 = vsyncpa [#allocation4], 1 }

</bundles_post_ra>
